<compile_context>
chip_gen: v7x
topology: tpu7x:2x2x1
jax: 0.10.0
libtpu: 0.0.40
codegen_flags: <defaults>
</compile_context>

<pallas_src>
import itertools
from collections import Counter

import jax
import jax.numpy as jnp
from jax.experimental import pallas as pl
from jax.experimental.pallas import tpu as pltpu

LANE = 128


def sorted_monomial_exponents(dim, order):
    """Replicates TotalDegreeTrig.__init__: multisets of indices of size <= order,
    returned as per-dimension exponent tuples in sorted(self.indc) order."""
    indc = Counter(
        map(
            lambda t: tuple(sorted(t)),
            itertools.chain(
                *[itertools.product(*[range(dim) for _ in range(o)]) for o in range(order + 1)]
            ),
        )
    )
    inds = sorted(indc)  # lexicographic tuple sort, empty tuple (constant term) first
    exps = [tuple(ind.count(d) for d in range(dim)) for ind in inds]
    return exps


def make_total_degree_trig_kernel(exps, dim):
    """Kernel closed over the static exponent table (compile-time constants).

    Refs (transposed, packed layout):
      x_ref: (dim, r_blk, 128)      -- batch packed over sublanes+lanes
      o_ref: (nterms, r_blk, 128)   -- one dense slab per term
    """
    nmono = len(exps)

    def kernel(x_ref, o_ref):
        # Per-dimension slabs, each (r_blk, 128): fully dense vregs.
        xs = [x_ref[d] for d in range(dim)]

        # Monomial terms: at most (total degree - 1) VPU multiplies each, built
        # directly from xs so the live vreg set stays small (xs + one term).
        for c, e in enumerate(exps):
            term = None
            for d in range(dim):
                for _ in range(e[d]):
                    term = xs[d] if term is None else term * xs[d]
            if term is None:                      # constant (all-zero exponents) term
                term = jnp.ones_like(xs[0])
            o_ref[c] = term.astype(o_ref.dtype)

        # Trig terms on the first two coordinates (EUP slot, effectively free).
        o_ref[nmono + 0] = jnp.cos(xs[0]).astype(o_ref.dtype)
        o_ref[nmono + 1] = jnp.sin(xs[0]).astype(o_ref.dtype)
        o_ref[nmono + 2] = jnp.cos(xs[1]).astype(o_ref.dtype)
        o_ref[nmono + 3] = jnp.sin(xs[1]).astype(o_ref.dtype)

    return kernel


def total_degree_trig(x, order, block_rows=128):
    """Pallas wrapper: x is (N, dim) -> (N, nterms).

    block_rows: sublane rows (of 128 lanes each) per grid step, i.e.
    block_rows*128 batch elements per step.  Must be a multiple of 8 when the
    grid has more than one step (it is clamped / used full-extent otherwise).
    """
    N, dim = x.shape
    assert dim >= 2, "forward uses cos/sin of x[:,0] and x[:,1]"
    exps = sorted_monomial_exponents(dim, order)
    nterms = len(exps) + 4

    # Pack the batch axis onto (rows, 128 lanes).
    r_total = pl.cdiv(N, LANE)
    if r_total <= block_rows:
        r_blk = r_total                    # single full-extent block: always legal
        r_pad = r_total
    else:
        assert block_rows % 8 == 0, "block_rows must be a multiple of 8 when tiling"
        r_blk = block_rows
        r_pad = pl.cdiv(r_total, r_blk) * r_blk
    n_pad = r_pad * LANE

    # Transposed, packed orientation (cheap wrapper-side layout plumbing).
    x_t = x.T                              # (dim, N)
    if n_pad != N:
        x_t = jnp.pad(x_t, ((0, 0), (0, n_pad - N)))
    x3 = x_t.reshape(dim, r_pad, LANE)     # (dim, R, 128)

    kernel = make_total_degree_trig_kernel(exps, dim)
    out3 = pl.pallas_call(
        kernel,
        out_shape=jax.ShapeDtypeStruct((nterms, r_pad, LANE), x.dtype),
        grid=(r_pad // r_blk,),
        in_specs=[pl.BlockSpec((dim, r_blk, LANE), lambda i: (0, i, 0))],
        out_specs=pl.BlockSpec((nterms, r_blk, LANE), lambda i: (0, i, 0)),
        compiler_params=pltpu.CompilerParams(dimension_semantics=("parallel",)),
    )(x3)

    out = out3.reshape(nterms, n_pad).T    # (n_pad, nterms)
    if n_pad != N:
        out = out[:N]
    return out


def total_degree_trig_ref(x, order):
    """Pure-JAX reference mirroring the PyTorch forward exactly."""
    dim = x.shape[-1]
    exps = sorted_monomial_exponents(dim, order)
    cols = []
    for e in exps:
        term = jnp.ones(x.shape[:-1], x.dtype)
        for d in range(dim):
            term = term * (x[..., d] ** e[d])
        cols.append(term[..., None])
    cols.append(jnp.cos(x[:, 0])[..., None])
    cols.append(jnp.sin(x[:, 0])[..., None])
    cols.append(jnp.cos(x[:, 1])[..., None])
    cols.append(jnp.sin(x[:, 1])[..., None])
    return jnp.concatenate(cols, axis=-1)


if __name__ == "__main__":
    key = jax.random.PRNGKey(0)

    # Small case implied by the forward: x is (N, dim); single full-extent block.
    N, dim, order = 8, 2, 3
    x = jax.random.normal(key, (N, dim), dtype=jnp.float32)
    out = jax.block_until_ready(total_degree_trig(x, order))
    ref = total_degree_trig_ref(x, order)
    assert out.shape == ref.shape, (out.shape, ref.shape)
    assert jnp.allclose(out, ref, atol=1e-5, rtol=1e-5), "mismatch vs reference (small)"

    # Larger case exercising the tiled / padded multi-step grid path.
    N2, dim2, order2 = 3000, 3, 2
    x2 = jax.random.normal(jax.random.PRNGKey(1), (N2, dim2), dtype=jnp.float32)
    out2 = jax.block_until_ready(total_degree_trig(x2, order2, block_rows=8))
    ref2 = total_degree_trig_ref(x2, order2)
    assert out2.shape == ref2.shape, (out2.shape, ref2.shape)
    assert jnp.allclose(out2, ref2, atol=1e-5, rtol=1e-5), "mismatch vs reference (tiled)"

    # Default-tile case (block_rows=128 -> 16K batch elements per grid step).
    N3, dim3, order3 = 20000, 2, 3
    x3 = jax.random.normal(jax.random.PRNGKey(2), (N3, dim3), dtype=jnp.float32)
    out3 = jax.block_until_ready(total_degree_trig(x3, order3))
    ref3 = total_degree_trig_ref(x3, order3)
    assert out3.shape == ref3.shape, (out3.shape, ref3.shape)
    assert jnp.allclose(out3, ref3, atol=1e-5, rtol=1e-5), "mismatch vs reference (default tile)"

    print("KERNEL_OK")
</pallas_src>

<mosaic_0001>
module attributes {stable_mosaic.version = 11 : i64} {
  func.func @kernel(%arg0: i32, %arg1: memref<2x1x128xf32, #tpu.memory_space<vmem>>, %arg2: memref<14x1x128xf32, #tpu.memory_space<vmem>>) attributes {dimension_semantics = [#tpu.dimension_semantics<parallel>], iteration_bounds = array<i64: 1>, scalar_prefetch = 0 : i64, scratch_operands = 0 : i64, tpu.core_type = #tpu.core_type<tc>, window_params = [{transform_indices = @transform_0, window_bounds = array<i64: 2, 1, 128>}, {transform_indices = @transform_1, window_bounds = array<i64: 14, 1, 128>}]} {
    %c0 = arith.constant 0 : index
    %c0_0 = arith.constant 0 : index
    %c0_1 = arith.constant 0 : index
    %0 = vector.load %arg1[%c0, %c0_0, %c0_1] : memref<2x1x128xf32, #tpu.memory_space<vmem>>, vector<1x1x128xf32>
    %1 = vector.shape_cast %0 : vector<1x1x128xf32> to vector<1x128xf32>
    %c1 = arith.constant 1 : index
    %c0_2 = arith.constant 0 : index
    %c0_3 = arith.constant 0 : index
    %2 = vector.load %arg1[%c1, %c0_2, %c0_3] : memref<2x1x128xf32, #tpu.memory_space<vmem>>, vector<1x1x128xf32>
    %3 = vector.shape_cast %2 : vector<1x1x128xf32> to vector<1x128xf32>
    %cst = arith.constant 1.000000e+00 : f32
    %4 = vector.broadcast %cst : f32 to vector<1x128xf32>
    %c0_4 = arith.constant 0 : index
    %c0_5 = arith.constant 0 : index
    %c0_6 = arith.constant 0 : index
    %5 = vector.load %arg2[%c0_4, %c0_5, %c0_6] : memref<14x1x128xf32, #tpu.memory_space<vmem>>, vector<1x1x128xf32>
    %6 = vector.shape_cast %5 : vector<1x1x128xf32> to vector<1x128xf32>
    %7 = vector.shape_cast %4 : vector<1x128xf32> to vector<1x1x128xf32>
    tpu.vector_store %arg2[%c0_4, %c0_5, %c0_6], %7 {strides = array<i32>} : memref<14x1x128xf32, #tpu.memory_space<vmem>>, vector<1x1x128xf32>,
    %c1_7 = arith.constant 1 : index
    %c0_8 = arith.constant 0 : index
    %c0_9 = arith.constant 0 : index
    %8 = vector.load %arg2[%c1_7, %c0_8, %c0_9] : memref<14x1x128xf32, #tpu.memory_space<vmem>>, vector<1x1x128xf32>
    %9 = vector.shape_cast %8 : vector<1x1x128xf32> to vector<1x128xf32>
    %10 = vector.shape_cast %1 : vector<1x128xf32> to vector<1x1x128xf32>
    tpu.vector_store %arg2[%c1_7, %c0_8, %c0_9], %10 {strides = array<i32>} : memref<14x1x128xf32, #tpu.memory_space<vmem>>, vector<1x1x128xf32>,
    %11 = arith.mulf %1, %1 : vector<1x128xf32>
    %c2 = arith.constant 2 : index
    %c0_10 = arith.constant 0 : index
    %c0_11 = arith.constant 0 : index
    %12 = vector.load %arg2[%c2, %c0_10, %c0_11] : memref<14x1x128xf32, #tpu.memory_space<vmem>>, vector<1x1x128xf32>
    %13 = vector.shape_cast %12 : vector<1x1x128xf32> to vector<1x128xf32>
    %14 = vector.shape_cast %11 : vector<1x128xf32> to vector<1x1x128xf32>
    tpu.vector_store %arg2[%c2, %c0_10, %c0_11], %14 {strides = array<i32>} : memref<14x1x128xf32, #tpu.memory_space<vmem>>, vector<1x1x128xf32>,
    %15 = arith.mulf %1, %1 : vector<1x128xf32>
    %16 = arith.mulf %15, %1 : vector<1x128xf32>
    %c3 = arith.constant 3 : index
    %c0_12 = arith.constant 0 : index
    %c0_13 = arith.constant 0 : index
    %17 = vector.load %arg2[%c3, %c0_12, %c0_13] : memref<14x1x128xf32, #tpu.memory_space<vmem>>, vector<1x1x128xf32>
    %18 = vector.shape_cast %17 : vector<1x1x128xf32> to vector<1x128xf32>
    %19 = vector.shape_cast %16 : vector<1x128xf32> to vector<1x1x128xf32>
    tpu.vector_store %arg2[%c3, %c0_12, %c0_13], %19 {strides = array<i32>} : memref<14x1x128xf32, #tpu.memory_space<vmem>>, vector<1x1x128xf32>,
    %20 = arith.mulf %1, %1 : vector<1x128xf32>
    %21 = arith.mulf %20, %3 : vector<1x128xf32>
    %c4 = arith.constant 4 : index
    %c0_14 = arith.constant 0 : index
    %c0_15 = arith.constant 0 : index
    %22 = vector.load %arg2[%c4, %c0_14, %c0_15] : memref<14x1x128xf32, #tpu.memory_space<vmem>>, vector<1x1x128xf32>
    %23 = vector.shape_cast %22 : vector<1x1x128xf32> to vector<1x128xf32>
    %24 = vector.shape_cast %21 : vector<1x128xf32> to vector<1x1x128xf32>
    tpu.vector_store %arg2[%c4, %c0_14, %c0_15], %24 {strides = array<i32>} : memref<14x1x128xf32, #tpu.memory_space<vmem>>, vector<1x1x128xf32>,
    %25 = arith.mulf %1, %3 : vector<1x128xf32>
    %c5 = arith.constant 5 : index
    %c0_16 = arith.constant 0 : index
    %c0_17 = arith.constant 0 : index
    %26 = vector.load %arg2[%c5, %c0_16, %c0_17] : memref<14x1x128xf32, #tpu.memory_space<vmem>>, vector<1x1x128xf32>
    %27 = vector.shape_cast %26 : vector<1x1x128xf32> to vector<1x128xf32>
    %28 = vector.shape_cast %25 : vector<1x128xf32> to vector<1x1x128xf32>
    tpu.vector_store %arg2[%c5, %c0_16, %c0_17], %28 {strides = array<i32>} : memref<14x1x128xf32, #tpu.memory_space<vmem>>, vector<1x1x128xf32>,
    %29 = arith.mulf %1, %3 : vector<1x128xf32>
    %30 = arith.mulf %29, %3 : vector<1x128xf32>
    %c6 = arith.constant 6 : index
    %c0_18 = arith.constant 0 : index
    %c0_19 = arith.constant 0 : index
    %31 = vector.load %arg2[%c6, %c0_18, %c0_19] : memref<14x1x128xf32, #tpu.memory_space<vmem>>, vector<1x1x128xf32>
    %32 = vector.shape_cast %31 : vector<1x1x128xf32> to vector<1x128xf32>
    %33 = vector.shape_cast %30 : vector<1x128xf32> to vector<1x1x128xf32>
    tpu.vector_store %arg2[%c6, %c0_18, %c0_19], %33 {strides = array<i32>} : memref<14x1x128xf32, #tpu.memory_space<vmem>>, vector<1x1x128xf32>,
    %c7 = arith.constant 7 : index
    %c0_20 = arith.constant 0 : index
    %c0_21 = arith.constant 0 : index
    %34 = vector.load %arg2[%c7, %c0_20, %c0_21] : memref<14x1x128xf32, #tpu.memory_space<vmem>>, vector<1x1x128xf32>
    %35 = vector.shape_cast %34 : vector<1x1x128xf32> to vector<1x128xf32>
    %36 = vector.shape_cast %3 : vector<1x128xf32> to vector<1x1x128xf32>
    tpu.vector_store %arg2[%c7, %c0_20, %c0_21], %36 {strides = array<i32>} : memref<14x1x128xf32, #tpu.memory_space<vmem>>, vector<1x1x128xf32>,
    %37 = arith.mulf %3, %3 : vector<1x128xf32>
    %c8 = arith.constant 8 : index
    %c0_22 = arith.constant 0 : index
    %c0_23 = arith.constant 0 : index
    %38 = vector.load %arg2[%c8, %c0_22, %c0_23] : memref<14x1x128xf32, #tpu.memory_space<vmem>>, vector<1x1x128xf32>
    %39 = vector.shape_cast %38 : vector<1x1x128xf32> to vector<1x128xf32>
    %40 = vector.shape_cast %37 : vector<1x128xf32> to vector<1x1x128xf32>
    tpu.vector_store %arg2[%c8, %c0_22, %c0_23], %40 {strides = array<i32>} : memref<14x1x128xf32, #tpu.memory_space<vmem>>, vector<1x1x128xf32>,
    %41 = arith.mulf %3, %3 : vector<1x128xf32>
    %42 = arith.mulf %41, %3 : vector<1x128xf32>
    %c9 = arith.constant 9 : index
    %c0_24 = arith.constant 0 : index
    %c0_25 = arith.constant 0 : index
    %43 = vector.load %arg2[%c9, %c0_24, %c0_25] : memref<14x1x128xf32, #tpu.memory_space<vmem>>, vector<1x1x128xf32>
    %44 = vector.shape_cast %43 : vector<1x1x128xf32> to vector<1x128xf32>
    %45 = vector.shape_cast %42 : vector<1x128xf32> to vector<1x1x128xf32>
    tpu.vector_store %arg2[%c9, %c0_24, %c0_25], %45 {strides = array<i32>} : memref<14x1x128xf32, #tpu.memory_space<vmem>>, vector<1x1x128xf32>,
    %46 = math.cos %1 : vector<1x128xf32>
    %c10 = arith.constant 10 : index
    %c0_26 = arith.constant 0 : index
    %c0_27 = arith.constant 0 : index
    %47 = vector.load %arg2[%c10, %c0_26, %c0_27] : memref<14x1x128xf32, #tpu.memory_space<vmem>>, vector<1x1x128xf32>
    %48 = vector.shape_cast %47 : vector<1x1x128xf32> to vector<1x128xf32>
    %49 = vector.shape_cast %46 : vector<1x128xf32> to vector<1x1x128xf32>
    tpu.vector_store %arg2[%c10, %c0_26, %c0_27], %49 {strides = array<i32>} : memref<14x1x128xf32, #tpu.memory_space<vmem>>, vector<1x1x128xf32>,
    %50 = math.sin %1 : vector<1x128xf32>
    %c11 = arith.constant 11 : index
    %c0_28 = arith.constant 0 : index
    %c0_29 = arith.constant 0 : index
    %51 = vector.load %arg2[%c11, %c0_28, %c0_29] : memref<14x1x128xf32, #tpu.memory_space<vmem>>, vector<1x1x128xf32>
    %52 = vector.shape_cast %51 : vector<1x1x128xf32> to vector<1x128xf32>
    %53 = vector.shape_cast %50 : vector<1x128xf32> to vector<1x1x128xf32>
    tpu.vector_store %arg2[%c11, %c0_28, %c0_29], %53 {strides = array<i32>} : memref<14x1x128xf32, #tpu.memory_space<vmem>>, vector<1x1x128xf32>,
    %54 = math.cos %3 : vector<1x128xf32>
    %c12 = arith.constant 12 : index
    %c0_30 = arith.constant 0 : index
    %c0_31 = arith.constant 0 : index
    %55 = vector.load %arg2[%c12, %c0_30, %c0_31] : memref<14x1x128xf32, #tpu.memory_space<vmem>>, vector<1x1x128xf32>
    %56 = vector.shape_cast %55 : vector<1x1x128xf32> to vector<1x128xf32>
    %57 = vector.shape_cast %54 : vector<1x128xf32> to vector<1x1x128xf32>
    tpu.vector_store %arg2[%c12, %c0_30, %c0_31], %57 {strides = array<i32>} : memref<14x1x128xf32, #tpu.memory_space<vmem>>, vector<1x1x128xf32>,
    %58 = math.sin %3 : vector<1x128xf32>
    %c13 = arith.constant 13 : index
    %c0_32 = arith.constant 0 : index
    %c0_33 = arith.constant 0 : index
    %59 = vector.load %arg2[%c13, %c0_32, %c0_33] : memref<14x1x128xf32, #tpu.memory_space<vmem>>, vector<1x1x128xf32>
    %60 = vector.shape_cast %59 : vector<1x1x128xf32> to vector<1x128xf32>
    %61 = vector.shape_cast %58 : vector<1x128xf32> to vector<1x1x128xf32>
    tpu.vector_store %arg2[%c13, %c0_32, %c0_33], %61 {strides = array<i32>} : memref<14x1x128xf32, #tpu.memory_space<vmem>>, vector<1x1x128xf32>,
    return
  }
  func.func @transform_0(%arg0: i32) -> (i32, i32, i32) {
    %c0_i32 = arith.constant 0 : i32
    %c0_i32_0 = arith.constant 0 : i32
    %c0_i32_1 = arith.constant 0 : i32
    return %c0_i32, %arg0, %c0_i32_0 : i32, i32, i32
  }
  func.func @transform_1(%arg0: i32) -> (i32, i32, i32) {
    %c0_i32 = arith.constant 0 : i32
    %c0_i32_0 = arith.constant 0 : i32
    %c0_i32_1 = arith.constant 0 : i32
    return %c0_i32, %arg0, %c0_i32_0 : i32, i32, i32
  }
}

</mosaic_0001>

<bundles_post_ra>
// kernel: tpu_custom_call.1
= control target key start
LH: loop header
LB: loop body
LE: loop exit
PB: predicated region body
PF: predicated region fallthrough
CT: control target
= control target key end

     0   :  { %6 = vsyncpa [#allocation3], 0  ;;  %s713_s0 = inlined_call_operand.hbm [shape: f32[2,1,128], index: 0, kind: input, shape index: {}]   ;;  %s714_s1 = inlined_call_operand.hbm [shape: f32[14,1,128], index: 1, kind: output, shape index: {}]  }
   0x1   :  { %7 = vsyncpa [#allocation4], 0  ;;  %s582_s6 = smov [#allocation2]   ;;  %s534_s10 = scalar_lea.hbm %s713_s0, 32 }
   0x2   :  { %s13_s7 = sshll.u32 %s582_s6, 4  ;;  %p535_p0 = scmp.ne.s32.totalorder %s713_s0, %s534_s10  ;;  %s14_s7 = int_to_ptr.vmem [resolvable:$true] %s13_s7 }
   0x3   :  { %p538_p1 = scmp.lt.u32.totalorder %s534_s10, %s713_s0 }
   0x5   :  { %p540_p2 = pnand %p538_p1, %p535_p0 }
   0x7   :  { %543 = shalt.err (!%p540_p2)
}
   0x8   :  { %s544_s15 = scalar_lea.vmem %s14_s7, 32  ;;  %p549_p4 = scmp.lt.s32.totalorder %s14_s7, %s14_s7 }
   0x9   :  { %p545_p3 = scmp.ne.s32.totalorder %s14_s7, %s544_s15  ;;  %p550_p5 = scmp.lt.s32.totalorder %s544_s15, %s544_s15 }
   0xb   :  { %p551_p6 = por %p550_p5, %p549_p4 }
   0xd   :  { %p552_p7 = pnand %p551_p6, %p545_p3 }
   0xf   :  { %555 = shalt.err (!%p552_p7)
}
  0x10   :  { %s583_s16 = smov 16   ;;  %s584_s17 = smov 1  }
  0x11   :  { %19 = dma.hbm_to_vmem [thread:$0]  %s713_s0, 32, %s14_s7, [#allocation3], %s583_s16, %s583_s16, %s584_s17  }
  0x12   :  { %578 = dma.done.wait [#allocation3], 32  }
  0x13   :  { %579 = vsyncadd [#allocation3], 4294967264  ;;  %v585_v0 = vmov 1.0   ;;  %v618_v1 = vld [vmem:[#allocation2] sm:$0x1]  ;;  %s592_s0 = smov [#allocation5]  }
  0x14   :  { %26 = vst [vmem:[#allocation5] sm:$0x1] %v585_v0  ;;  %v620_v2 = vld [vmem:[#allocation2 + $0x1] sm:$0x1]  ;;  %28 = vst [vmem:[#allocation5 + $0x1] sm:$0x1] %v618_v1  ;;  %v29_v3 = vmul.f32 %v618_v1, %v618_v1 }
  0x15   :  { %45 = vst [vmem:[#allocation5 + $0x7] sm:$0x1] %v620_v2  ;;  %v38_v4 = vmul.f32 %v620_v2, %v618_v1  ;;  %v46_v5 = vmul.f32 %v620_v2, %v620_v2  ;;  %v52_v6 = vand.u32 2147483647, %v618_v1  ;;  %v55_v7 = vand.u32 2139095040, %v618_v1  ;;  %s479_s20 = sshll.u32 %s592_s0, 4  ;;  %s480_s20 = int_to_ptr.vmem [resolvable:$true] %s479_s20 }
  0x16   :  { %31 = vst [vmem:[#allocation5 + $0x2] sm:$0x1] %v29_v3  ;;  %v32_v8 = vmul.f32 %v29_v3, %v618_v1  ;;  %v35_v9 = vmul.f32 %v29_v3, %v620_v2  ;;  %v263_v14 = vand.u32 2147483647, %v620_v2  ;;  %v266_v15 = vand.u32 2139095040, %v620_v2  ;;  %s556_s21 = scalar_lea.vmem %s480_s20, 224  ;;  %p561_p9 = scmp.lt.s32.totalorder %s480_s20, %s480_s20 }
  0x17   :  { %40 = vst [vmem:[#allocation5 + $0x5] sm:$0x1] %v38_v4  ;;  %v41_v10 = vmul.f32 %v38_v4, %v620_v2  ;;  %48 = vst [vmem:[#allocation5 + $0x8] sm:$0x1] %v46_v5  ;;  %v49_v11 = vmul.f32 %v46_v5, %v620_v2  ;;  %v56_v12 = vshrl.u32 %v55_v7, 23  ;;  %vm54_vm14 = vcmp.lt.s32.totalorder %v618_v1, 0  ;;  %p557_p8 = scmp.ne.s32.totalorder %s480_s20, %s556_s21  ;;  %p562_p10 = scmp.lt.s32.totalorder %s556_s21, %s556_s21 }
  0x18   :  { %34 = vst [vmem:[#allocation5 + $0x3] sm:$0x1] %v32_v8  ;;  %37 = vst [vmem:[#allocation5 + $0x4] sm:$0x1] %v35_v9  ;;  %v59_v13 = vand.u32 8388607, %v52_v6 }
  0x19   :  { %43 = vst [vmem:[#allocation5 + $0x6] sm:$0x1] %v41_v10  ;;  %51 = vst [vmem:[#allocation5 + $0x9] sm:$0x1] %v49_v11  ;;  %v491_v16 = vadd.s32 4294967169, %v56_v12  ;;  %v267_v17 = vshrl.u32 %v266_v15, 23  ;;  %p563_p11 = por %p562_p10, %p561_p9 }
  0x1a   :  { %v60_v19 = vor.u32 8388608, %v59_v13  ;;  %v642_v21 = vand.u32 8388607, %v263_v14  ;;  %v586_v29 = vmov 683565275  }
  0x1b   :  { %v62_v18 = vadd.s32 1, %v491_v16  ;;  %v499_v20 = vadd.s32 4294967169, %v267_v17  ;;  %v587_v31 = vmov 2475754826   ;;  %v588_v33 = vmov 2131351028   ;;  %p564_p12 = pnand %p563_p11, %p557_p8 }
  0x1c   :  { %v644_v26 = vshll.u32 %v60_v19, 8  ;;  %v271_v27 = vor.u32 8388608, %v642_v21  ;;  %v589_v35 = vmov 2102212464   ;;  %v590_v37 = vmov 920167782  }
  0x1d   :  { %vm63_vm0 = vcmp.gt.s32.totalorder %v62_v18, 0  ;;  %v273_v23 = vadd.s32 1, %v499_v20  ;;  %v591_v44 = vmov 1326507024   ;;  %vm53_vm15 = vcmp.le.f32.partialorder %v52_v6, 0.7853982 }
  0x1e   :  { %v64_v22 = vsel %vm63_vm0, %v62_v18, 0  ;;  %vm265_vm0 = vcmp.lt.s32.totalorder %v620_v2, 0 }
  0x1f   :  { %v65_v24 = vshrl.u32 %v64_v22, 5  ;;  %v66_v25 = vand.u32 31, %v64_v22  ;;  %vm274_vm1 = vcmp.gt.s32.totalorder %v273_v23, 0 }
  0x20   :  { %v275_v49 = vsel %vm274_vm1, %v273_v23, 0  ;;  %vm264_vm1 = vcmp.le.f32.partialorder %v263_v14, 0.7853982 }
  0x21   :  { %v67_v28 = vsub.s32 32, %v66_v25  ;;  %v69_v30 = vshll.u32 %v586_v29, %v66_v25  ;;  %v72_v32 = vshll.u32 %v587_v31, %v66_v25  ;;  %v75_v34 = vshll.u32 %v588_v33, %v66_v25 }
  0x22   :  { %v78_v36 = vshll.u32 %v589_v35, %v66_v25  ;;  %v81_v38 = vshll.u32 %v590_v37, %v66_v25  ;;  %vm84_vm2 = vcmp.lt.s32.totalorder %v65_v24, 1  ;;  %vm85_vm3 = vcmp.lt.s32.totalorder %v65_v24, 2 }
  0x23   :  { %v68_v39 = vshrl.u32 %v586_v29, %v67_v28  ;;  %v70_v40 = vshrl.u32 %v587_v31, %v67_v28  ;;  %v73_v41 = vshrl.u32 %v588_v33, %v67_v28  ;;  %v76_v42 = vshrl.u32 %v589_v35, %v67_v28 }
  0x24   :  { %v79_v43 = vshrl.u32 %v590_v37, %v67_v28  ;;  %v82_v45 = vshrl.u32 %v591_v44, %v67_v28  ;;  %vm86_vm4 = vcmp.lt.s32.totalorder %v65_v24, 3  ;;  %vm87_vm5 = vcmp.lt.s32.totalorder %v65_v24, 4 }
  0x25   :  { %v71_v46 = vor.u32 %v70_v40, %v69_v30  ;;  %v74_v47 = vor.u32 %v73_v41, %v72_v32  ;;  %v77_v48 = vor.u32 %v76_v42, %v75_v34  ;;  %v276_v52 = vshrl.u32 %v275_v49, 5 }
  0x26   :  { %v80_v50 = vor.u32 %v79_v43, %v78_v36  ;;  %v83_v51 = vor.u32 %v82_v45, %v81_v38  ;;  %v277_v53 = vand.u32 31, %v275_v49 }
  0x27   :  { %v88_v54 = vsel %vm84_vm2, %v68_v39, %v71_v46  ;;  %v89_v55 = vsel %vm87_vm5, %v77_v48, 2102212464  ;;  %v92_v56 = vsel %vm84_vm2, %v71_v46, %v74_v47  ;;  %v96_v57 = vsel %vm84_vm2, %v74_v47, %v77_v48 }
  0x28   :  { %v90_v58 = vsel %vm86_vm4, %v74_v47, %v89_v55  ;;  %v93_v59 = vsel %vm87_vm5, %v80_v50, 920167782  ;;  %v97_v60 = vsel %vm87_vm5, %v83_v51, 1326507024  ;;  %v278_v61 = vsub.s32 32, %v277_v53 }
  0x29   :  { %v91_v62 = vsel %vm85_vm3, %v88_v54, %v90_v58  ;;  %v94_v63 = vsel %vm86_vm4, %v77_v48, %v93_v59  ;;  %v98_v0 = vsel %vm86_vm4, %v80_v50, %v97_v60  ;;  %v280_v3 = vshll.u32 %v586_v29, %v277_v53 }
  0x2a   :  { %v95_v4 = vsel %vm85_vm3, %v92_v56, %v94_v63  ;;  %v99_v5 = vsel %vm85_vm3, %v96_v57, %v98_v0  ;;  %v107_v7 = vmul.u32 %v644_v26, %v91_v62  ;;  %v279_v8 = vshrl.u32 %v586_v29, %v278_v61 }
  0x2b   :  { %v659_v9 = vmul.u32.u64.low %v644_v26, %v99_v5  ;;  %v660_v10 = vmul.u32.u64.high %v644_v26, %v99_v5, %v659_v9  ;;  %v663_v11 = vmul.u32.u64.low %v644_v26, %v95_v4  ;;  %v664_v12 = vmul.u32.u64.high %v644_v26, %v95_v4, %v663_v11 }
  0x2c   :  { %v281_v13 = vshrl.u32 %v587_v31, %v278_v61  ;;  %v283_v15 = vshll.u32 %v587_v31, %v277_v53  ;;  %v284_v16 = vshrl.u32 %v588_v33, %v278_v61  ;;  %v286_v17 = vshll.u32 %v588_v33, %v277_v53 }
  0x2d   :  { %v287_v18 = vshrl.u32 %v589_v35, %v278_v61  ;;  %v289_v19 = vshll.u32 %v589_v35, %v277_v53  ;;  %v290_v20 = vshrl.u32 %v590_v37, %v278_v61  ;;  %v292_v22 = vshll.u32 %v590_v37, %v277_v53 }
  0x2e   :  { %v282_v23 = vor.u32 %v281_v13, %v280_v3  ;;  %v285_v24 = vor.u32 %v284_v16, %v283_v15  ;;  %v293_v25 = vshrl.u32 %v591_v44, %v278_v61  ;;  %vm295_vm6 = vcmp.lt.s32.totalorder %v276_v52, 1 }
  0x2f   :  { %vm109_vm7 = vc.u32 %v660_v10, %v663_v11  ;;  %v110_v28 = vadd.s32 1, %v664_v12  ;;  %v288_v29 = vor.u32 %v287_v18, %v286_v17  ;;  %v311_v26 = vshll.u32 %v271_v27, 8 }
  0x30   :  { %v291_v30 = vor.u32 %v290_v20, %v289_v19  ;;  %v294_v31 = vor.u32 %v293_v25, %v292_v22  ;;  %vm296_vm8 = vcmp.lt.s32.totalorder %v276_v52, 2  ;;  %vm297_vm9 = vcmp.lt.s32.totalorder %v276_v52, 3 }
  0x31   :  { %v111_v32 = vsel %vm109_vm7, %v110_v28, %v664_v12  ;;  %vm298_vm10 = vcmp.lt.s32.totalorder %v276_v52, 4  ;;  %v299_v33 = vsel %vm295_vm6, %v279_v8, %v282_v23  ;;  %v303_v34 = vsel %vm295_vm6, %v282_v23, %v285_v24 }
  0x32   :  { %v112_v35 = vadd.s32 %v111_v32, %v107_v7  ;;  %v300_v36 = vsel %vm298_vm10, %v288_v29, 2102212464  ;;  %v304_v37 = vsel %vm298_vm10, %v291_v30, 920167782  ;;  %v307_v38 = vsel %vm295_vm6, %v285_v24, %v288_v29 }
  0x33   :  { %v301_v39 = vsel %vm297_vm9, %v285_v24, %v300_v36  ;;  %v305_v40 = vsel %vm297_vm9, %v288_v29, %v304_v37  ;;  %v308_v21 = vsel %vm298_vm10, %v294_v31, 1326507024  ;;  %v108_v63 = vadd.s32 %v663_v11, %v660_v10 }
  0x34   :  { %v113_v27 = vadd.s32 536870912, %v112_v35  ;;  %v306_v41 = vsel %vm296_vm8, %v303_v34, %v305_v40  ;;  %v309_v42 = vsel %vm297_vm9, %v291_v30, %v308_v21  ;;  %v302_v43 = vsel %vm296_vm8, %v299_v33, %v301_v39 }
  0x35   :  { %v310_v44 = vsel %vm296_vm8, %v307_v38, %v309_v42  ;;  %v677_v45 = vmul.u32.u64.low %v311_v26, %v306_v41  ;;  %v678_v46 = vmul.u32.u64.high %v311_v26, %v306_v41, %v677_v45  ;;  %v318_v51 = vmul.u32 %v311_v26, %v302_v43 }
  0x36   :  { %v114_v47 = vshrl.u32 %v113_v27, 30  ;;  %v680_v48 = vmul.u32.u64.low %v311_v26, %v310_v44  ;;  %v681_v49 = vmul.u32.u64.high %v311_v26, %v310_v44, %v680_v48  ;;  %vm144_vm8 = vweird.f32 %v618_v1 }
  0x37   :  { %v321_v53 = vadd.s32 1, %v678_v46 }
  0x38   :  { %v115_v50 = vshll.u32 %v114_v47, 30  ;;  %vm320_vm11 = vc.u32 %v681_v49, %v677_v45  ;;  %v138_v23 = vsub.s32 4, %v114_v47  ;;  %v319_v10 = vadd.s32 %v677_v45, %v681_v49 }
  0x39   :  { %v322_v55 = vsel %vm320_vm11, %v321_v53, %v678_v46 }
  0x3a   :  { %v116_v54 = vsub.s32 %v112_v35, %v115_v50  ;;  %v323_v57 = vadd.s32 %v322_v55, %v318_v51  ;;  %v139_v30 = vsel %vm54_vm14, %v138_v23, %v114_v47 }
  0x3b   :  { %v141_v35 = vsel %vm53_vm15, 0, %v139_v30 }
  0x3c   :  { %v118_v56 = vsub.s32 0, %v116_v54  ;;  %v324_v58 = vadd.s32 536870912, %v323_v57  ;;  %v250_v40 = vadd.s32 3, %v141_v35  ;;  %v145_v42 = vand.u32 3, %v141_v35 }
  0x3e   :  { %v492_v52 = vmin.u32 %v118_v56, %v116_v54  ;;  %v325_v60 = vshrl.u32 %v324_v58, 30  ;;  %v251_v6 = vand.u32 3, %v250_v40  ;;  %vm150_vm2 = vcmp.eq.s32.totalorder %v145_v42, 2 }
  0x3f   :  { %vm147_vm4 = vcmp.eq.s32.totalorder %v145_v42, 0  ;;  %vm146_vm6 = vcmp.lt.s32.totalorder %v145_v42, 2 }
  0x40   :  { %v120_v59 = vclz %v492_v52  ;;  %v326_v62 = vshll.u32 %v325_v60, 30  ;;  %v349_v27 = vsub.s32 4, %v325_v60  ;;  %vm256_vm3 = vcmp.eq.s32.totalorder %v251_v6, 2 }
  0x41   :  { %vm253_vm5 = vcmp.eq.s32.totalorder %v251_v6, 0  ;;  %vm252_vm7 = vcmp.lt.s32.totalorder %v251_v6, 2 }
  0x42   :  { %v493_v61 = vadd.s32 4294967294, %v120_v59  ;;  %v327_v3 = vsub.s32 %v323_v57, %v326_v62  ;;  %v350_v44 = vsel %vm265_vm0, %v349_v27, %v325_v60 }
  0x43   :  { %v352_v48 = vsel %vm264_vm1, 0, %v350_v44 }
  0x44   :  { %vm494_vm12 = vcmp.lt.s32.totalorder %v493_v61, 0  ;;  %v329_v8 = vsub.s32 0, %v327_v3  ;;  %v356_v60 = vand.u32 3, %v352_v48 }
  0x45   :  { %v123_v0 = vsel %vm494_vm12, 0, %v493_v61 }
  0x46   :  { %v124_v4 = vsub.s32 32, %v123_v0  ;;  %v125_v5 = vshll.u32 %v116_v54, %v123_v0  ;;  %v128_v7 = vsub.s32 4294967266, %v123_v0  ;;  %v500_v13 = vmin.u32 %v329_v8, %v327_v3 }
  0x47   :  { %v461_v54 = vadd.s32 3, %v352_v48  ;;  %vm361_vm9 = vcmp.eq.s32.totalorder %v356_v60, 2  ;;  %vm358_vm11 = vcmp.eq.s32.totalorder %v356_v60, 0 }
  0x48   :  { %v126_v9 = vshrl.u32 %v108_v63, %v124_v4  ;;  %v129_v12 = vadd.s32 127, %v128_v7  ;;  %v331_v17 = vclz %v500_v13 }
  0x49   :  { %v462_v61 = vand.u32 3, %v461_v54 }
  0x4a   :  { %v127_v15 = vor.u32 %v126_v9, %v125_v5  ;;  %v130_v16 = vshll.u32 %v129_v12, 23  ;;  %v501_v20 = vadd.s32 4294967294, %v331_v17 }
  0x4b   :  { %vm467_vm10 = vcmp.eq.s32.totalorder %v462_v61, 2  ;;  %vm464_vm12 = vcmp.eq.s32.totalorder %v462_v61, 0 }
  0x4c   :  { %v131_v18 = vor.u32 4788187, %v130_v16  ;;  %v134_v19 = vcvt.s32.f32 %v127_v15  ;;  %vm502_vm13 = vcmp.lt.s32.totalorder %v501_v20, 0 }
  0x4d   :  { %v334_v24 = vsel %vm502_vm13, 0, %v501_v20  ;;  %vm357_vm13 = vcmp.lt.s32.totalorder %v356_v60, 2 }
  0x4e   :  { %v132_v22 = vand.u32 2147483647, %v131_v18  ;;  %v335_v25 = vsub.s32 32, %v334_v24  ;;  %v336_v28 = vshll.u32 %v327_v3, %v334_v24  ;;  %v339_v29 = vsub.s32 4294967266, %v334_v24 }
  0x50   :  { %v135_v11 = vmul.f32 %v134_v19, %v132_v22  ;;  %v337_v31 = vshrl.u32 %v319_v10, %v335_v25  ;;  %v340_v32 = vadd.s32 127, %v339_v29 }
  0x52   :  { %v136_v26 = vxor.u32 2147483648, %v135_v11  ;;  %v338_v36 = vor.u32 %v337_v31, %v336_v28  ;;  %v341_v37 = vshll.u32 %v340_v32, 23 }
  0x54   :  { %v137_v33 = vsel %vm54_vm14, %v136_v26, %v135_v11  ;;  %v342_v38 = vor.u32 4788187, %v341_v37  ;;  %v345_v39 = vcvt.s32.f32 %v338_v36  ;;  %vm463_vm14 = vcmp.lt.s32.totalorder %v462_v61, 2 }
  0x55   :  { %v140_v34 = vsel %vm53_vm15, %v618_v1, %v137_v33  ;;  %vm355_vm15 = vweird.f32 %v620_v2 }
  0x56   :  { %526 = vcosq.f32 %v140_v34  ;;  %v343_v21 = vand.u32 2147483647, %v342_v38 }
  0x57   :  { %528 = vsinq.f32 %v140_v34 }
  0x58   :  { %v346_v41 = vmul.f32 %v345_v39, %v343_v21 }
  0x5a   :  { %v347_v43 = vxor.u32 2147483648, %v346_v41 }
  0x5c   :  { %v348_v45 = vsel %vm265_vm0, %v347_v43, %v346_v41 }
  0x5d   :  { %v351_v47 = vsel %vm264_vm1, %v620_v2, %v348_v45 }
  0x5e   :  { %530 = vcosq.f32 %v351_v47 }
  0x5f   :  { %532 = vsinq.f32 %v351_v47 }
  0x60   :  { %v527_v46 = vpop.eup %526 }
  0x61   :  { %v529_v49 = vpop.eup %528  ;;  %v151_v50 = vxor.u32 2147483648, %v527_v46 }
  0x62   :  { %v148_v51 = vxor.u32 2147483648, %v529_v49 }
  0x63   :  { %v152_v14 = vsel %vm150_vm2, %v151_v50, %v529_v49  ;;  %v258_v53 = vsel %vm256_vm3, %v151_v50, %v529_v49 }
  0x64   :  { %v149_v55 = vsel %vm147_vm4, %v527_v46, %v148_v51  ;;  %v255_v56 = vsel %vm253_vm5, %v527_v46, %v148_v51 }
  0x65   :  { %v153_v57 = vsel %vm146_vm6, %v149_v55, %v152_v14  ;;  %v259_v52 = vsel %vm252_vm7, %v255_v56, %v258_v53 }
  0x66   :  { %v154_v58 = vsel %vm144_vm8, nan, %v153_v57  ;;  %v260_v59 = vsel %vm144_vm8, nan, %v259_v52 }
  0x67   :  { %156 = vst [vmem:[#allocation5 + $0xa] sm:$0x1] %v154_v58  ;;  %262 = vst [vmem:[#allocation5 + $0xb] sm:$0x1] %v260_v59 }
  0x68   :  { %v531_v62 = vpop.eup %530 }
  0x69   :  { %v533_v63 = vpop.eup %532  ;;  %v362_v0 = vxor.u32 2147483648, %v531_v62 }
  0x6a   :  { %v359_v1 = vxor.u32 2147483648, %v533_v63 }
  0x6b   :  { %v363_v3 = vsel %vm361_vm9, %v362_v0, %v533_v63  ;;  %v469_v4 = vsel %vm467_vm10, %v362_v0, %v533_v63 }
  0x6c   :  { %v360_v5 = vsel %vm358_vm11, %v531_v62, %v359_v1  ;;  %v466_v7 = vsel %vm464_vm12, %v531_v62, %v359_v1 }
  0x6d   :  { %v364_v8 = vsel %vm357_vm13, %v360_v5, %v363_v3  ;;  %v470_v9 = vsel %vm463_vm14, %v466_v7, %v469_v4 }
  0x6e   :  { %v365_v12 = vsel %vm355_vm15, nan, %v364_v8  ;;  %v471_v13 = vsel %vm355_vm15, nan, %v470_v9 }
  0x6f   :  { %367 = vst [vmem:[#allocation5 + $0xc] sm:$0x1] %v365_v12  ;;  %473 = vst [vmem:[#allocation5 + $0xd] sm:$0x1] %v471_v13 }
  0x70   :  { %567 = shalt.err (!%p564_p12)
}
  0x71   :  { %s568_s24 = scalar_lea.hbm %s714_s1, 224 }
  0x72   :  { %p569_p13 = scmp.ne.s32.totalorder %s714_s1, %s568_s24  ;;  %p572_p0 = scmp.lt.u32.totalorder %s568_s24, %s714_s1 }
  0x74   :  { %p574_p1 = pnand %p572_p0, %p569_p13 }
  0x76   :  { %577 = shalt.err (!%p574_p1)
}
  0x77   :  { %485 = dma.vmem_to_hbm [thread:$0]  %s480_s20, 224, %s714_s1, [#allocation4], %s583_s16, %s583_s16, %s584_s17  }
  0x78   :  { %580 = dma.done.wait [#allocation4], 224  }
  0x79   :  { %581 = vsyncadd [#allocation4], 4294967072 }
  0x7a   :  { %489 = vsyncpa [#allocation3], 1 }
  0x7b   :  { %490 = vsyncpa [#allocation4], 1 }

</bundles_post_ra>
